<compile_context>
chip_gen: v5e
topology: v5e:2x2
jax: 0.10.0
libtpu: 0.0.40
codegen_flags: <defaults>
</compile_context>

<pallas_src>
import functools

import jax
import jax.numpy as jnp
from jax import lax
from jax.experimental import pallas as pl
from jax.experimental.pallas import tpu as pltpu

BN_EPS = 1e-5


def _round_up(x, m):
    return (x + m - 1) // m * m


# ---------------------------------------------------------------------------
# Pass 1: conv matmul + per-channel sum / sumsq accumulation; finalize the
# folded BN affine (scale, bias) on the last grid step.
# ---------------------------------------------------------------------------
def _stats_kernel(patches_ref, w_ref, gamma_ref, beta_ref, sb_ref,
                  sum_sc, ssq_sc, *, inv_m):
    step = pl.program_id(0)

    @pl.when(step == 0)
    def _():
        sum_sc[...] = jnp.zeros_like(sum_sc)
        ssq_sc[...] = jnp.zeros_like(ssq_sc)

    # bf16 x bf16 -> f32 accumulate on the MXU.
    y = jnp.dot(patches_ref[...], w_ref[...],
                preferred_element_type=jnp.float32)            # [tm, Cp]

    sum_sc[...] += jnp.sum(y, axis=0, keepdims=True)
    ssq_sc[...] += jnp.sum(y * y, axis=0, keepdims=True)

    @pl.when(step == pl.num_programs(0) - 1)
    def _():
        mean = sum_sc[...] * inv_m
        ex2 = ssq_sc[...] * inv_m
        # TODO(synk): E[x^2] - mean^2 can cancel for very large M with tiny
        # variance; a per-tile Welford merge would be numerically safer.
        var = jnp.maximum(ex2 - mean * mean, 0.0)
        scale = gamma_ref[...] * lax.rsqrt(var + BN_EPS)
        bias = beta_ref[...] - mean * scale
        sb_ref[0:1, :] = scale
        sb_ref[1:2, :] = bias


# ---------------------------------------------------------------------------
# Pass 2: recompute conv matmul, apply folded BN (single FMA) + ReLU6.
# ---------------------------------------------------------------------------
def _apply_kernel(patches_ref, w_ref, sb_ref, o_ref, *, act):
    y = jnp.dot(patches_ref[...], w_ref[...],
                preferred_element_type=jnp.float32)            # [tm, Cp]
    out = y * sb_ref[0:1, :] + sb_ref[1:2, :]
    if act:
        out = jnp.clip(out, 0.0, 6.0)
    o_ref[...] = out.astype(o_ref.dtype)


def _im2col_nchw(x, k, s):
    """x: [N, C, H, W] -> [N*Ho*Wo, C*k*k] (channel-major patch flattening,
    matching torch weight.reshape(Cout, Cin*k*k) ordering)."""
    N, C, H, W = x.shape
    Ho = (H - k) // s + 1
    Wo = (W - k) // s + 1
    cols = []
    for i in range(k):
        for j in range(k):
            cols.append(x[:, :, i:i + Ho * s:s, j:j + Wo * s:s])   # [N,C,Ho,Wo]
    p = jnp.stack(cols, axis=2)                                    # [N,C,k*k,Ho,Wo]
    p = p.reshape(N, C * k * k, Ho, Wo)
    p = p.transpose(0, 2, 3, 1).reshape(N * Ho * Wo, C * k * k)
    return p, Ho, Wo


def cba_block(x, weight, gamma, beta, *, k=3, s=1, p=0, act=True, tile_m=512):
    """x: [N, C_in, H, W] (NCHW), weight: [C_out, C_in, k, k]. Returns NCHW f32."""
    if p > 0:
        x = jnp.pad(x, ((0, 0), (0, 0), (p, p), (p, p)))
    N, Cin, H, W = x.shape
    Cout = weight.shape[0]

    # im2col in bf16 (halves the HBM traffic of the patch matrix).
    # TODO(synk): for large images, express the conv as k*k shifted
    # [tile, Cin] x [Cin, Cout] matmuls over an NHWC tile (halo DMA) so the
    # k*k-inflated patch matrix is never materialized in HBM.
    patches, Ho, Wo = _im2col_nchw(x.astype(jnp.bfloat16), k, s)
    M, K = patches.shape

    # Lane-dense channels: pad Cout up to a multiple of 128.
    Cp = _round_up(Cout, 128)
    # Row tiling: pad M to a multiple of the tile. Zero-padded rows contribute
    # nothing to sum / sumsq, so dividing by the true M keeps stats exact.
    tm = min(tile_m, _round_up(M, 8))
    M_pad = _round_up(M, tm)
    n_tiles = M_pad // tm

    patches = jnp.pad(patches, ((0, M_pad - M), (0, 0)))
    w2d = weight.reshape(Cout, Cin * k * k).T.astype(jnp.bfloat16)      # [K, Cout]
    w2d = jnp.pad(w2d, ((0, 0), (0, Cp - Cout)))
    gamma2d = jnp.pad(gamma.reshape(1, Cout).astype(jnp.float32),
                      ((0, 0), (0, Cp - Cout)))
    beta2d = jnp.pad(beta.reshape(1, Cout).astype(jnp.float32),
                     ((0, 0), (0, Cp - Cout)))

    patch_spec = pl.BlockSpec((tm, K), lambda i: (i, 0))
    w_spec = pl.BlockSpec((K, Cp), lambda i: (0, 0))      # resident weights
    vec_spec = pl.BlockSpec((1, Cp), lambda i: (0, 0))    # resident gamma/beta
    sb_spec = pl.BlockSpec((2, Cp), lambda i: (0, 0))     # resident scale/bias
    out_spec = pl.BlockSpec((tm, Cp), lambda i: (i, 0))

    flops = 2 * M_pad * K * Cp
    bytes_in = M_pad * K * 2 + K * Cp * 2

    # ---- pass 1: batch statistics -> folded (scale, bias) -------------------
    scale_bias = pl.pallas_call(
        functools.partial(_stats_kernel, inv_m=1.0 / float(M)),
        out_shape=jax.ShapeDtypeStruct((2, Cp), jnp.float32),
        grid=(n_tiles,),
        in_specs=[patch_spec, w_spec, vec_spec, vec_spec],
        out_specs=sb_spec,
        scratch_shapes=[pltpu.VMEM((1, Cp), jnp.float32),
                        pltpu.VMEM((1, Cp), jnp.float32)],
        compiler_params=pltpu.CompilerParams(
            dimension_semantics=("arbitrary",),       # stats accumulate over M
            vmem_limit_bytes=48 << 20),               # v7x-safe headroom
        cost_estimate=pl.CostEstimate(flops=flops, transcendentals=0,
                                      bytes_accessed=bytes_in + 2 * Cp * 4),
    )(patches, w2d, gamma2d, beta2d)

    # ---- pass 2: recompute conv, apply BN (FMA) + ReLU6 ---------------------
    out2d = pl.pallas_call(
        functools.partial(_apply_kernel, act=act),
        out_shape=jax.ShapeDtypeStruct((M_pad, Cp), jnp.float32),
        grid=(n_tiles,),
        in_specs=[patch_spec, w_spec, sb_spec],
        out_specs=out_spec,
        compiler_params=pltpu.CompilerParams(
            dimension_semantics=("parallel",),        # rows independent -> megacore
            vmem_limit_bytes=48 << 20),
        cost_estimate=pl.CostEstimate(flops=flops, transcendentals=0,
                                      bytes_accessed=bytes_in + M_pad * Cp * 4),
    )(patches, w2d, scale_bias)

    # [M, Cout] -> [N, Ho, Wo, Cout] -> NCHW (kept for module-level semantics).
    out = out2d[:M, :Cout].reshape(N, Ho, Wo, Cout).transpose(0, 3, 1, 2)
    return out


def _reference(x, weight, gamma, beta, k, s, p):
    if p > 0:
        x = jnp.pad(x, ((0, 0), (0, 0), (p, p), (p, p)))
    y = lax.conv_general_dilated(x, weight, (s, s), "VALID",
                                 dimension_numbers=("NCHW", "OIHW", "NCHW"))
    mean = y.mean(axis=(0, 2, 3), keepdims=True)
    var = y.var(axis=(0, 2, 3), keepdims=True)
    yh = (y - mean) * lax.rsqrt(var + BN_EPS)
    out = yh * gamma.reshape(1, -1, 1, 1) + beta.reshape(1, -1, 1, 1)
    return jnp.clip(out, 0.0, 6.0)


if __name__ == "__main__":
    # Small shapes: N=2, C_in=4, H=W=16, C_out=8, k=3, s=1, p=0 -> out [2, 8, 14, 14]
    N, Cin, H, W = 2, 4, 16, 16
    Cout, k, s, p = 8, 3, 1, 0

    key = jax.random.PRNGKey(0)
    kx, kw = jax.random.split(key)
    x = jax.random.normal(kx, (N, Cin, H, W), dtype=jnp.float32)
    weight = 0.1 * jax.random.normal(kw, (Cout, Cin, k, k), dtype=jnp.float32)
    gamma = jnp.ones((Cout,), dtype=jnp.float32)   # BN affine defaults
    beta = jnp.zeros((Cout,), dtype=jnp.float32)

    out = cba_block(x, weight, gamma, beta, k=k, s=s, p=p)
    jax.block_until_ready(out)
    assert out.shape == (N, Cout, H - k + 1, W - k + 1)

    ref = _reference(x, weight, gamma, beta, k, s, p)
    assert jnp.max(jnp.abs(out - ref)) < 5e-2, "mismatch vs f32 reference"

    print("KERNEL_OK")
</pallas_src>

<mosaic_0001>
module attributes {stable_mosaic.version = 11 : i64} {
  func.func @_stats_kernel(%arg0: i32, %arg1: memref<392x36xbf16, #tpu.memory_space<vmem>>, %arg2: memref<36x128xbf16, #tpu.memory_space<vmem>>, %arg3: memref<1x128xf32, #tpu.memory_space<vmem>>, %arg4: memref<1x128xf32, #tpu.memory_space<vmem>>, %arg5: memref<2x128xf32, #tpu.memory_space<vmem>>, %arg6: memref<1x128xf32, #tpu.memory_space<vmem>>, %arg7: memref<1x128xf32, #tpu.memory_space<vmem>>) attributes {dimension_semantics = [#tpu.dimension_semantics<arbitrary>], iteration_bounds = array<i64: 1>, scalar_prefetch = 0 : i64, scratch_operands = 2 : i64, tpu.core_type = #tpu.core_type<tc>, window_params = [{transform_indices = @transform_0, window_bounds = array<i64: 392, 36>}, {pipeline_mode = #tpu.pipeline_mode<synchronous>, transform_indices = @transform_1, window_bounds = array<i64: 36, 128>}, {pipeline_mode = #tpu.pipeline_mode<synchronous>, transform_indices = @transform_2, window_bounds = array<i64: 1, 128>}, {pipeline_mode = #tpu.pipeline_mode<synchronous>, transform_indices = @transform_3, window_bounds = array<i64: 1, 128>}, {pipeline_mode = #tpu.pipeline_mode<synchronous>, transform_indices = @transform_4, window_bounds = array<i64: 2, 128>}]} {
    %c0_i32 = arith.constant 0 : i32
    %0 = arith.cmpi eq, %arg0, %c0_i32 : i32
    %1 = arith.extui %0 : i1 to i32
    %c0_i32_0 = arith.constant 0 : i32
    %2 = arith.cmpi ne, %1, %c0_i32_0 : i32
    scf.if %2 {
      %cst_16 = arith.constant 0.000000e+00 : f32
      %20 = vector.broadcast %cst_16 : f32 to vector<1x128xf32>
      %c0_17 = arith.constant 0 : index
      %c0_18 = arith.constant 0 : index
      %21 = vector.load %arg6[%c0_17, %c0_18] : memref<1x128xf32, #tpu.memory_space<vmem>>, vector<1x128xf32>
      tpu.vector_store %arg6[%c0_17, %c0_18], %20 {strides = array<i32>} : memref<1x128xf32, #tpu.memory_space<vmem>>, vector<1x128xf32>,
      %cst_19 = arith.constant 0.000000e+00 : f32
      %22 = vector.broadcast %cst_19 : f32 to vector<1x128xf32>
      %c0_20 = arith.constant 0 : index
      %c0_21 = arith.constant 0 : index
      %23 = vector.load %arg7[%c0_20, %c0_21] : memref<1x128xf32, #tpu.memory_space<vmem>>, vector<1x128xf32>
      tpu.vector_store %arg7[%c0_20, %c0_21], %22 {strides = array<i32>} : memref<1x128xf32, #tpu.memory_space<vmem>>, vector<1x128xf32>,
    } else {
    }
    %c0 = arith.constant 0 : index
    %c0_1 = arith.constant 0 : index
    %3 = vector.load %arg1[%c0, %c0_1] : memref<392x36xbf16, #tpu.memory_space<vmem>>, vector<392x36xbf16>
    %c0_2 = arith.constant 0 : index
    %c0_3 = arith.constant 0 : index
    %4 = vector.load %arg2[%c0_2, %c0_3] : memref<36x128xbf16, #tpu.memory_space<vmem>>, vector<36x128xbf16>
    %cst = arith.constant dense<0.000000e+00> : vector<392x128xf32>
    %5 = tpu.matmul %3, %4, %cst {dimension_numbers = #tpu.dot_dimension_numbers<[1], [0], [0], [1], [0, 0, 1, 1], [], []>} : vector<392x36xbf16>, vector<36x128xbf16>, vector<392x128xf32> -> vector<392x128xf32>
    %c0_4 = arith.constant 0 : index
    %c0_5 = arith.constant 0 : index
    %6 = vector.load %arg6[%c0_4, %c0_5] : memref<1x128xf32, #tpu.memory_space<vmem>>, vector<1x128xf32>
    %cst_6 = arith.constant dense<0.000000e+00> : vector<128xf32>
    %7 = vector.multi_reduction <add>, %5, %cst_6 [0] : vector<392x128xf32> to vector<128xf32>
    %8 = vector.shape_cast %7 : vector<128xf32> to vector<1x128xf32>
    %9 = arith.addf %6, %8 : vector<1x128xf32>
    %c0_7 = arith.constant 0 : index
    %c0_8 = arith.constant 0 : index
    %10 = vector.load %arg6[%c0_7, %c0_8] : memref<1x128xf32, #tpu.memory_space<vmem>>, vector<1x128xf32>
    tpu.vector_store %arg6[%c0_7, %c0_8], %9 {strides = array<i32>} : memref<1x128xf32, #tpu.memory_space<vmem>>, vector<1x128xf32>,
    %c0_9 = arith.constant 0 : index
    %c0_10 = arith.constant 0 : index
    %11 = vector.load %arg7[%c0_9, %c0_10] : memref<1x128xf32, #tpu.memory_space<vmem>>, vector<1x128xf32>
    %12 = arith.mulf %5, %5 : vector<392x128xf32>
    %cst_11 = arith.constant dense<0.000000e+00> : vector<128xf32>
    %13 = vector.multi_reduction <add>, %12, %cst_11 [0] : vector<392x128xf32> to vector<128xf32>
    %14 = vector.shape_cast %13 : vector<128xf32> to vector<1x128xf32>
    %15 = arith.addf %11, %14 : vector<1x128xf32>
    %c0_12 = arith.constant 0 : index
    %c0_13 = arith.constant 0 : index
    %16 = vector.load %arg7[%c0_12, %c0_13] : memref<1x128xf32, #tpu.memory_space<vmem>>, vector<1x128xf32>
    tpu.vector_store %arg7[%c0_12, %c0_13], %15 {strides = array<i32>} : memref<1x128xf32, #tpu.memory_space<vmem>>, vector<1x128xf32>,
    %c0_i32_14 = arith.constant 0 : i32
    %17 = arith.cmpi eq, %arg0, %c0_i32_14 : i32
    %18 = arith.extui %17 : i1 to i32
    %c0_i32_15 = arith.constant 0 : i32
    %19 = arith.cmpi ne, %18, %c0_i32_15 : i32
    scf.if %19 {
      %c0_16 = arith.constant 0 : index
      %c0_17 = arith.constant 0 : index
      %20 = vector.load %arg6[%c0_16, %c0_17] : memref<1x128xf32, #tpu.memory_space<vmem>>, vector<1x128xf32>
      %cst_18 = arith.constant 0.00255102036 : f32
      %21 = vector.broadcast %cst_18 : f32 to vector<1x128xf32>
      %22 = arith.mulf %20, %21 : vector<1x128xf32>
      %c0_19 = arith.constant 0 : index
      %c0_20 = arith.constant 0 : index
      %23 = vector.load %arg7[%c0_19, %c0_20] : memref<1x128xf32, #tpu.memory_space<vmem>>, vector<1x128xf32>
      %cst_21 = arith.constant 0.00255102036 : f32
      %24 = vector.broadcast %cst_21 : f32 to vector<1x128xf32>
      %25 = arith.mulf %23, %24 : vector<1x128xf32>
      %26 = arith.mulf %22, %22 : vector<1x128xf32>
      %27 = arith.subf %25, %26 : vector<1x128xf32>
      %cst_22 = arith.constant 0.000000e+00 : f32
      %28 = vector.broadcast %cst_22 : f32 to vector<1x128xf32>
      %29 = arith.maximumf %27, %28 : vector<1x128xf32>
      %c0_23 = arith.constant 0 : index
      %c0_24 = arith.constant 0 : index
      %30 = vector.load %arg3[%c0_23, %c0_24] : memref<1x128xf32, #tpu.memory_space<vmem>>, vector<1x128xf32>
      %cst_25 = arith.constant 9.99999974E-6 : f32
      %31 = vector.broadcast %cst_25 : f32 to vector<1x128xf32>
      %32 = arith.addf %29, %31 : vector<1x128xf32>
      %33 = math.rsqrt %32 : vector<1x128xf32>
      %34 = arith.mulf %30, %33 : vector<1x128xf32>
      %c0_26 = arith.constant 0 : index
      %c0_27 = arith.constant 0 : index
      %35 = vector.load %arg4[%c0_26, %c0_27] : memref<1x128xf32, #tpu.memory_space<vmem>>, vector<1x128xf32>
      %36 = arith.mulf %22, %34 : vector<1x128xf32>
      %37 = arith.subf %35, %36 : vector<1x128xf32>
      %c0_28 = arith.constant 0 : index
      %c0_29 = arith.constant 0 : index
      %38 = vector.load %arg5[%c0_28, %c0_29] : memref<2x128xf32, #tpu.memory_space<vmem>>, vector<1x128xf32>
      tpu.vector_store %arg5[%c0_28, %c0_29], %34 {strides = array<i32>} : memref<2x128xf32, #tpu.memory_space<vmem>>, vector<1x128xf32>,
      %c1 = arith.constant 1 : index
      %c0_30 = arith.constant 0 : index
      %39 = vector.load %arg5[%c1, %c0_30] : memref<2x128xf32, #tpu.memory_space<vmem>>, vector<1x128xf32>
      tpu.vector_store %arg5[%c1, %c0_30], %37 {strides = array<i32>} : memref<2x128xf32, #tpu.memory_space<vmem>>, vector<1x128xf32>,
    } else {
    }
    return
  }
  func.func @transform_0(%arg0: i32) -> (i32, i32) {
    %c0_i32 = arith.constant 0 : i32
    %c0_i32_0 = arith.constant 0 : i32
    return %arg0, %c0_i32 : i32, i32
  }
  func.func @transform_1(%arg0: i32) -> (i32, i32) {
    %c0_i32 = arith.constant 0 : i32
    %c0_i32_0 = arith.constant 0 : i32
    %c0_i32_1 = arith.constant 0 : i32
    return %c0_i32, %c0_i32_0 : i32, i32
  }
  func.func @transform_2(%arg0: i32) -> (i32, i32) {
    %c0_i32 = arith.constant 0 : i32
    %c0_i32_0 = arith.constant 0 : i32
    %c0_i32_1 = arith.constant 0 : i32
    return %c0_i32, %c0_i32_0 : i32, i32
  }
  func.func @transform_3(%arg0: i32) -> (i32, i32) {
    %c0_i32 = arith.constant 0 : i32
    %c0_i32_0 = arith.constant 0 : i32
    %c0_i32_1 = arith.constant 0 : i32
    return %c0_i32, %c0_i32_0 : i32, i32
  }
  func.func @transform_4(%arg0: i32) -> (i32, i32) {
    %c0_i32 = arith.constant 0 : i32
    %c0_i32_0 = arith.constant 0 : i32
    %c0_i32_1 = arith.constant 0 : i32
    return %c0_i32, %c0_i32_0 : i32, i32
  }
}

</mosaic_0001>

<bundles_post_ra>
// kernel: tpu_custom_call.1
= control target key start
LH: loop header
LB: loop body
LE: loop exit
PB: predicated region body
PF: predicated region fallthrough
CT: control target
= control target key end

     0   :  { %vm293_vm0 = vcmask 1041408   ;;  %s1121_s0 = inlined_call_operand.vmem [shape: bf16[392,36], index: 0, kind: input, shape index: {}]   ;;  %s1122_s1 = inlined_call_operand.vmem [shape: bf16[36,128], index: 1, kind: input, shape index: {}]   ;;  %s1123_s2 = inlined_call_operand.vmem [shape: f32[1,128], index: 2, kind: input, shape index: {}]   ;;  %s1124_s3 = inlined_call_operand.vmem [shape: f32[1,128], index: 3, kind: input, shape index: {}]   ;;  %s1125_s4 = inlined_call_operand.hbm [shape: f32[2,128], index: 4, kind: output, shape index: {}]  }
   0x1   :  { %v78_v0 = vld [vmem:[%s1122_s1 + $0x10] sm:$0x3] }
   0x2   :  { %v211_v1 = vunpack.c.l.b16 %v78_v0 }
   0x4   :  { %v214_v2 = vpack.c.b16 %v211_v1, %v211_v1 }
   0x5   :  { %9 = vsyncpa [#allocation5], 0  ;;  %v791_v4 = vld [vmem:[%s1122_s1 + $0x8] sm:$0xff]  ;;  %v790_v5 = vld [vmem:[%s1122_s1] sm:$0xff]  ;;  %vm217_vm1 = vcmask 293888   ;;  %s832_s20 = smov [#allocation4]  }
   0x6   :  { %v295_v3 = vsel %vm293_vm0, %v214_v2, 0  ;;  %v766_v6 = vld [vmem:[%s1121_s0] sm:$0xff]  ;;  %v772_v7 = vld [vmem:[%s1121_s0 + $0x30] sm:$0xff]  ;;  %v779_v8 = vld [vmem:[%s1121_s0 + $0x68] sm:$0xff]  ;;  %s626_s21 = sshll.u32 %s832_s20, 4  ;;  %s628_s24 = sshll.u32 %s1125_s4, 4  ;;  %s627_s21 = int_to_ptr.vmem [resolvable:$true] %s626_s21  ;;  %s629_s24 = int_to_ptr.hbm [resolvable:$true] %s628_s24 }
   0x7   :  { %302 = vmatpush.bf16.msra.mxu0 %v295_v3  ;;  %792 = vmatpush.bf16.msra.mxu1 %v295_v3  ;;  %v767_v9 = vld [vmem:[%s1121_s0 + $0x8] sm:$0xff]  ;;  %v773_v10 = vld [vmem:[%s1121_s0 + $0x38] sm:$0xff]  ;;  %v780_v11 = vld [vmem:[%s1121_s0 + $0x70] sm:$0xff] }
   0x8   :  { %793 = vmatpush.bf16.msra.mxu2 %v295_v3  ;;  %794 = vmatpush.bf16.msra.mxu3 %v295_v3  ;;  %v768_v12 = vld [vmem:[%s1121_s0 + $0x10] sm:$0xff]  ;;  %v774_v13 = vld [vmem:[%s1121_s0 + $0x40] sm:$0xff]  ;;  %v781_v14 = vld [vmem:[%s1121_s0 + $0x78] sm:$0xff] }
   0x9   :  { %v769_v15 = vld [vmem:[%s1121_s0 + $0x18] sm:$0xff]  ;;  %v775_v16 = vld [vmem:[%s1121_s0 + $0x48] sm:$0xff]  ;;  %v782_v17 = vld [vmem:[%s1121_s0 + $0x80] sm:$0xff] }
   0xa   :  { %v786_v18 = vld [vmem:[%s1121_s0 + $0xa0] sm:$0xff]  ;;  %v776_v20 = vld [vmem:[%s1121_s0 + $0x50] sm:$0xff]  ;;  %v783_v21 = vld [vmem:[%s1121_s0 + $0x88] sm:$0xff] }
   0xb   :  { %303 = vmatpush.bf16.msra.mxu0 %v791_v4  ;;  %795 = vmatpush.bf16.msra.mxu1 %v791_v4  ;;  %v770_v19 = vld [vmem:[%s1121_s0 + $0x20] sm:$0xff]  ;;  %v787_v22 = vld [vmem:[%s1121_s0 + $0xa8] sm:$0xff]  ;;  %v777_v24 = vld [vmem:[%s1121_s0 + $0x58] sm:$0xff] }
   0xc   :  { %796 = vmatpush.bf16.msra.mxu2 %v791_v4  ;;  %797 = vmatpush.bf16.msra.mxu3 %v791_v4  ;;  %v771_v23 = vld [vmem:[%s1121_s0 + $0x28] sm:$0xff]  ;;  %v784_v25 = vld [vmem:[%s1121_s0 + $0x90] sm:$0xff]  ;;  %v778_v27 = vld [vmem:[%s1121_s0 + $0x60] sm:$0xff] }
   0xd   :  { %v788_v26 = vld [vmem:[%s1121_s0 + $0xb0] sm:$0xff]  ;;  %v785_v28 = vld [vmem:[%s1121_s0 + $0x98] sm:$0xff]  ;;  %v73_v30 = vld [vmem:[%s1121_s0 + $0xc0] sm:$0xf] }
   0xe   :  { %v789_v29 = vld [vmem:[%s1121_s0 + $0xb8] sm:$0xff]  ;;  %v176_v31 = vunpack.c.l.b16 %v73_v30 }
   0xf   :  { %304 = vmatpush.bf16.msra.mxu0 %v790_v5  ;;  %798 = vmatpush.bf16.msra.mxu1 %v790_v5 }
  0x10   :  { %799 = vmatpush.bf16.msra.mxu2 %v790_v5  ;;  %800 = vmatpush.bf16.msra.mxu3 %v790_v5  ;;  %v201_v32 = vpack.c.b16 %v176_v31, %v176_v31 }
  0x12   :  { %741 = vmatmul.msk.bf16.vlgmr.msra.gmra.mxu0 %vm217_vm1, %v766_v6  ;;  %747 = vmatmul.msk.bf16.vlgmr.msra.gmra.mxu1 %vm217_vm1, %v772_v7 }
  0x13   :  { %754 = vmatmul.msk.bf16.vlgmr.msra.gmra.mxu2 %vm217_vm1, %v779_v8  ;;  %761 = vmatmul.msk.bf16.vlgmr.msra.gmra.mxu3 %vm217_vm1, %v786_v18 }
  0x22   :  { %742 = vmatmul.msk.bf16.gmra.mxu0 %vm217_vm1, %v767_v9  ;;  %748 = vmatmul.msk.bf16.gmra.mxu1 %vm217_vm1, %v773_v10 }
  0x23   :  { %755 = vmatmul.msk.bf16.gmra.mxu2 %vm217_vm1, %v780_v11  ;;  %762 = vmatmul.msk.bf16.gmra.mxu3 %vm217_vm1, %v787_v22 }
  0x32   :  { %743 = vmatmul.msk.bf16.gmra.mxu0 %vm217_vm1, %v768_v12  ;;  %749 = vmatmul.msk.bf16.gmra.mxu1 %vm217_vm1, %v774_v13 }
  0x33   :  { %756 = vmatmul.msk.bf16.gmra.mxu2 %vm217_vm1, %v781_v14  ;;  %763 = vmatmul.msk.bf16.gmra.mxu3 %vm217_vm1, %v788_v26 }
  0x42   :  { %744 = vmatmul.msk.bf16.gmra.mxu0 %vm217_vm1, %v769_v15  ;;  %750 = vmatmul.msk.bf16.gmra.mxu1 %vm217_vm1, %v775_v16 }
  0x43   :  { %757 = vmatmul.msk.bf16.gmra.mxu2 %vm217_vm1, %v782_v17  ;;  %764 = vmatmul.msk.bf16.gmra.mxu3 %vm217_vm1, %v789_v29 }
  0x52   :  { %745 = vmatmul.msk.bf16.gmra.mxu0 %vm217_vm1, %v770_v19  ;;  %751 = vmatmul.msk.bf16.gmra.mxu1 %vm217_vm1, %v776_v20 }
  0x53   :  { %758 = vmatmul.msk.bf16.gmra.mxu2 %vm217_vm1, %v783_v21  ;;  %765 = vmatmul.msk.bf16.gmra.mxu3 %vm217_vm1, %v201_v32 }
  0x62   :  { %746 = vmatmul.msk.bf16.gmra.mxu0 %vm217_vm1, %v771_v23  ;;  %752 = vmatmul.msk.bf16.gmra.mxu1 %vm217_vm1, %v777_v24 }
  0x63   :  { %759 = vmatmul.msk.bf16.gmra.mxu2 %vm217_vm1, %v784_v25 }
  0x72   :  { %753 = vmatmul.msk.bf16.gmra.mxu1 %vm217_vm1, %v778_v27 }
  0x73   :  { %760 = vmatmul.msk.bf16.gmra.mxu2 %vm217_vm1, %v785_v28 }
  0x8f   :  { %v306_v33 = vpop.f32.mrf.mxu0  ;;  %v967_v34 = vpop.f32.mrf.mxu1 }
  0x90   :  { %v488_v60 = vmul.f32 %v306_v33, %v306_v33 }
  0x96   :  { %v971_v37 = vpop.f32.mrf.mxu2  ;;  %v993_v54 = vpop.f32.mrf.mxu3 }
  0x97   :  { %v308_v35 = vpop.f32.mrf.mxu0  ;;  %v969_v36 = vpop.f32.mrf.mxu1 }
  0x98   :  { %v489_v59 = vmul.f32 %v308_v35, %v308_v35  ;;  %v431_v61 = vadd.f32 %v308_v35, %v306_v33 }
  0x9a   :  { %v537_v63 = vadd.f32 %v489_v59, %v488_v60  ;;  %v501_v59 = vmul.f32 %v969_v36, %v969_v36 }
  0x9e   :  { %v975_v40 = vpop.f32.mrf.mxu2  ;;  %v999_v58 = vpop.f32.mrf.mxu3 }
  0x9f   :  { %v311_v38 = vpop.f32.mrf.mxu0  ;;  %v973_v39 = vpop.f32.mrf.mxu1 }
  0xa0   :  { %v490_v62 = vmul.f32 %v311_v38, %v311_v38  ;;  %v432_v0 = vadd.f32 %v431_v61, %v311_v38 }
  0xa2   :  { %v538_v4 = vadd.f32 %v537_v63, %v490_v62  ;;  %v502_v63 = vmul.f32 %v973_v39, %v973_v39 }
  0xa6   :  { %v979_v43 = vpop.f32.mrf.mxu2  ;;  %v1005_v8 = vpop.f32.mrf.mxu3 }
  0xa7   :  { %v313_v41 = vpop.f32.mrf.mxu0  ;;  %v977_v42 = vpop.f32.mrf.mxu1 }
  0xa8   :  { %v491_v1 = vmul.f32 %v313_v41, %v313_v41  ;;  %v433_v5 = vadd.f32 %v432_v0, %v313_v41 }
  0xaa   :  { %v539_v9 = vadd.f32 %v538_v4, %v491_v1 }
  0xae   :  { %v985_v48 = vpop.f32.mrf.mxu2  ;;  %v1009_v23 = vpop.f32.mrf.mxu3 }
  0xaf   :  { %v316_v44 = vpop.f32.mrf.mxu0  ;;  %v981_v45 = vpop.f32.mrf.mxu1 }
  0xb0   :  { %v492_v6 = vmul.f32 %v316_v44, %v316_v44  ;;  %v434_v10 = vadd.f32 %v433_v5, %v316_v44 }
  0xb2   :  { %v540_v12 = vadd.f32 %v539_v9, %v492_v6  ;;  %v504_v6 = vmul.f32 %v981_v45, %v981_v45 }
  0xb6   :  { %v989_v51 = vpop.f32.mrf.mxu2  ;;  %v1011_v44 = vpop.f32.mrf.mxu3 }
  0xb7   :  { %v318_v46 = vpop.f32.mrf.mxu0  ;;  %v983_v47 = vpop.f32.mrf.mxu1 }
  0xb8   :  { %v493_v11 = vmul.f32 %v318_v46, %v318_v46  ;;  %v435_v13 = vadd.f32 %v434_v10, %v318_v46  ;;  %v500_v46 = vmul.f32 %v967_v34, %v967_v34  ;;  %v505_v10 = vmul.f32 %v983_v47, %v983_v47 }
  0xba   :  { %v541_v15 = vadd.f32 %v540_v12, %v493_v11 }
  0xbe   :  { %v995_v55 = vpop.f32.mrf.mxu2  ;;  %v1027_v5 = vpop.f32.mrf.mxu3 }
  0xbf   :  { %v321_v49 = vpop.f32.mrf.mxu0  ;;  %v987_v50 = vpop.f32.mrf.mxu1 }
  0xc0   :  { %v494_v14 = vmul.f32 %v321_v49, %v321_v49  ;;  %v436_v16 = vadd.f32 %v435_v13, %v321_v49 }
  0xc2   :  { %v542_v19 = vadd.f32 %v541_v15, %v494_v14 }
  0xc6   :  { %v1001_v3 = vpop.f32.mrf.mxu2 }
  0xc7   :  { %v323_v52 = vpop.f32.mrf.mxu0  ;;  %v991_v53 = vpop.f32.mrf.mxu1 }
  0xc8   :  { %v495_v17 = vmul.f32 %v323_v52, %v323_v52  ;;  %v437_v20 = vadd.f32 %v436_v16, %v323_v52  ;;  %v507_v16 = vmul.f32 %v991_v53, %v991_v53 }
  0xca   :  { %v543_v24 = vadd.f32 %v542_v19, %v495_v17 }
  0xce   :  { %v1007_v22 = vpop.f32.mrf.mxu2 }
  0xcf   :  { %v326_v56 = vpop.f32.mrf.mxu0  ;;  %v997_v57 = vpop.f32.mrf.mxu1 }
  0xd0   :  { %v496_v21 = vmul.f32 %v326_v56, %v326_v56  ;;  %v438_v25 = vadd.f32 %v437_v20, %v326_v56 }
  0xd2   :  { %v544_v28 = vadd.f32 %v543_v24, %v496_v21 }
  0xd6   :  { %v1016_v56 = vpop.f32.mrf.mxu2 }
  0xd7   :  { %v328_v2 = vpop.f32.mrf.mxu0  ;;  %v1003_v7 = vpop.f32.mrf.mxu1 }
  0xd8   :  { %v497_v26 = vmul.f32 %v328_v2, %v328_v2  ;;  %v439_v29 = vadd.f32 %v438_v25, %v328_v2  ;;  %v503_v2 = vmul.f32 %v977_v42, %v977_v42  ;;  %v509_v21 = vmul.f32 %v1003_v7, %v1003_v7 }
  0xda   :  { %v545_v31 = vadd.f32 %v544_v28, %v497_v26 }
  0xde   :  { %v1035_v12 = vpop.f32.mrf.mxu2 }
  0xdf   :  { %v331_v18 = vpop.f32.mrf.mxu0  ;;  %v361_v27 = vpop.f32.mrf.mxu1 }
  0xe0   :  { %v498_v30 = vmul.f32 %v331_v18, %v331_v18  ;;  %v440_v32 = vadd.f32 %v439_v29, %v331_v18  ;;  %v1043_v18 = vpop.f32.mrf.mxu3  ;;  %v510_v25 = vmul.f32 %v361_v27, %v361_v27 }
  0xe2   :  { %v546_v35 = vadd.f32 %v545_v31, %v498_v30 }
  0xe6   :  { %v396_v29 = vpop.f32.mrf.mxu2 }
  0xe7   :  { %v333_v33 = vpop.f32.mrf.mxu0  ;;  %v363_v62 = vpop.f32.mrf.mxu1 }
  0xe8   :  { %v441_v38 = vadd.f32 %v440_v32, %v333_v33  ;;  %v499_v41 = vmul.f32 %v333_v33, %v333_v33  ;;  %v511_v30 = vmul.f32 %v363_v62, %v363_v62  ;;  %v1051_v33 = vpop.f32.mrf.mxu3 }
  0xea   :  { %v442_v49 = vadd.f32 %v441_v38, %v967_v34  ;;  %v547_v52 = vadd.f32 %v546_v35, %v499_v41 }
  0xec   :  { %v443_v60 = vadd.f32 %v442_v49, %v969_v36  ;;  %v548_v61 = vadd.f32 %v547_v52, %v500_v46 }
  0xee   :  { %v444_v0 = vadd.f32 %v443_v60, %v973_v39  ;;  %v549_v1 = vadd.f32 %v548_v61, %v501_v59  ;;  %v515_v59 = vmul.f32 %v975_v40, %v975_v40 }
  0xef   :  { %v366_v15 = vpop.f32.mrf.mxu1 }
  0xf0   :  { %v445_v34 = vadd.f32 %v444_v0, %v977_v42  ;;  %v550_v4 = vadd.f32 %v549_v1, %v502_v63  ;;  %v506_v42 = vmul.f32 %v987_v50, %v987_v50  ;;  %v1059_v63 = vpop.f32.mrf.mxu3  ;;  %v516_v0 = vmul.f32 %v979_v43, %v979_v43 }
  0xf2   :  { %v446_v36 = vadd.f32 %v445_v34, %v981_v45  ;;  %v551_v9 = vadd.f32 %v550_v4, %v503_v2  ;;  %v517_v34 = vmul.f32 %v985_v48, %v985_v48 }
  0xf4   :  { %v447_v39 = vadd.f32 %v446_v36, %v983_v47  ;;  %v552_v11 = vadd.f32 %v551_v9, %v504_v6  ;;  %v508_v47 = vmul.f32 %v997_v57, %v997_v57  ;;  %v518_v6 = vmul.f32 %v989_v51, %v989_v51 }
  0xf5   :  { %v519_v9 = vmul.f32 %v995_v55, %v995_v55 }
  0xf6   :  { %v553_v13 = vadd.f32 %v552_v11, %v505_v10  ;;  %v448_v14 = vadd.f32 %v447_v39, %v987_v50  ;;  %v520_v11 = vmul.f32 %v1001_v3, %v1001_v3 }
  0xf7   :  { %v368_v32 = vpop.f32.mrf.mxu1 }
  0xf8   :  { %v449_v45 = vadd.f32 %v448_v14, %v991_v53  ;;  %v554_v17 = vadd.f32 %v553_v13, %v506_v42  ;;  %v513_v49 = vmul.f32 %v368_v32, %v368_v32  ;;  %v831_v14 = vmov 0.0  }
  0xf9   :  { %23 = vst [vmem:[#allocation2] sm:$0x1] %v831_v14 }
  0xfa   :  { %v450_v19 = vadd.f32 %v449_v45, %v997_v57  ;;  %v555_v20 = vadd.f32 %v554_v17, %v507_v16  ;;  %v512_v57 = vmul.f32 %v366_v15, %v366_v15  ;;  %24 = vst [vmem:[#allocation3] sm:$0x1] %v831_v14 }
  0xfc   :  { %v451_v50 = vadd.f32 %v450_v19, %v1003_v7  ;;  %v556_v24 = vadd.f32 %v555_v20, %v508_v47  ;;  %v514_v7 = vmul.f32 %v971_v37, %v971_v37 }
  0xfe   :  { %v452_v26 = vadd.f32 %v451_v50, %v361_v27  ;;  %v557_v28 = vadd.f32 %v556_v24, %v509_v21  ;;  %v524_v21 = vmul.f32 %v396_v29, %v396_v29 }
 0x100   :  { %v453_v53 = vadd.f32 %v452_v26, %v363_v62  ;;  %v558_v31 = vadd.f32 %v557_v28, %v510_v25  ;;  %v398_v62 = vpop.f32.mrf.mxu2 }
 0x102   :  { %v559_v35 = vadd.f32 %v558_v31, %v511_v30  ;;  %v454_v38 = vadd.f32 %v453_v53, %v366_v15 }
 0x104   :  { %v560_v41 = vadd.f32 %v559_v35, %v512_v57  ;;  %v455_v46 = vadd.f32 %v454_v38, %v368_v32  ;;  %v528_v35 = vmul.f32 %v993_v54, %v993_v54 }
 0x106   :  { %v456_v52 = vadd.f32 %v455_v46, %v971_v37  ;;  %v561_v27 = vadd.f32 %v560_v41, %v513_v49  ;;  %v530_v46 = vmul.f32 %v1005_v8, %v1005_v8 }
 0x108   :  { %v457_v60 = vadd.f32 %v456_v52, %v975_v40  ;;  %v562_v61 = vadd.f32 %v561_v27, %v514_v7  ;;  %v401_v13 = vpop.f32.mrf.mxu2  ;;  %v531_v52 = vmul.f32 %v1009_v23, %v1009_v23 }
 0x109   :  { %v526_v30 = vmul.f32 %v401_v13, %v401_v13 }
 0x10a   :  { %v458_v1 = vadd.f32 %v457_v60, %v979_v43  ;;  %v563_v2 = vadd.f32 %v562_v61, %v515_v59  ;;  %v428_v43 = vpop.f32.mrf.mxu3 }
 0x10c   :  { %v459_v37 = vadd.f32 %v458_v1, %v985_v48  ;;  %v564_v4 = vadd.f32 %v563_v2, %v516_v0  ;;  %v534_v1 = vmul.f32 %v1043_v18, %v1043_v18 }
 0x10e   :  { %v460_v40 = vadd.f32 %v459_v37, %v989_v51  ;;  %v565_v36 = vadd.f32 %v564_v4, %v517_v34  ;;  %v521_v51 = vmul.f32 %v1007_v22, %v1007_v22  ;;  %v535_v37 = vmul.f32 %v1051_v33, %v1051_v33 }
 0x110   :  { %v566_v10 = vadd.f32 %v565_v36, %v518_v6  ;;  %v461_v39 = vadd.f32 %v460_v40, %v995_v55  ;;  %v522_v55 = vmul.f32 %v1016_v56, %v1016_v56  ;;  %v403_v26 = vpop.f32.mrf.mxu2 }
 0x112   :  { %v462_v42 = vadd.f32 %v461_v39, %v1001_v3  ;;  %v567_v48 = vadd.f32 %v566_v10, %v519_v9  ;;  %v523_v3 = vmul.f32 %v1035_v12, %v1035_v12 }
 0x114   :  { %v463_v15 = vadd.f32 %v462_v42, %v1007_v22  ;;  %v568_v16 = vadd.f32 %v567_v48, %v520_v11  ;;  %v525_v22 = vmul.f32 %v398_v62, %v398_v62  ;;  %v430_v48 = vld [vmem:[#allocation2] sm:$0x1] }
 0x116   :  { %v464_v45 = vadd.f32 %v463_v15, %v1016_v56  ;;  %v569_v17 = vadd.f32 %v568_v16, %v521_v51  ;;  %v527_v56 = vmul.f32 %v403_v26, %v403_v26 }
 0x118   :  { %v465_v47 = vadd.f32 %v464_v45, %v1035_v12  ;;  %v570_v19 = vadd.f32 %v569_v17, %v522_v55 }
 0x11a   :  { %v466_v20 = vadd.f32 %v465_v47, %v396_v29  ;;  %v571_v50 = vadd.f32 %v570_v19, %v523_v3  ;;  %v529_v29 = vmul.f32 %v999_v58, %v999_v58 }
 0x11c   :  { %v572_v24 = vadd.f32 %v571_v50, %v524_v21  ;;  %v467_v25 = vadd.f32 %v466_v20, %v398_v62 }
 0x11e   :  { %v573_v28 = vadd.f32 %v572_v24, %v525_v22  ;;  %v468_v53 = vadd.f32 %v467_v25, %v401_v13 }
 0x120   :  { %v574_v31 = vadd.f32 %v573_v28, %v526_v30  ;;  %v469_v32 = vadd.f32 %v468_v53, %v403_v26  ;;  %v603_v26 = vld [vmem:[%s1123_s2] sm:$0x1] }
 0x122   :  { %v470_v38 = vadd.f32 %v469_v32, %v993_v54  ;;  %v575_v12 = vadd.f32 %v574_v31, %v527_v56  ;;  %v532_v54 = vmul.f32 %v1011_v44, %v1011_v44  ;;  %v616_v31 = vld [vmem:[%s1124_s3] sm:$0x1] }
 0x124   :  { %v471_v57 = vadd.f32 %v470_v38, %v999_v58  ;;  %v576_v41 = vadd.f32 %v575_v12, %v528_v35  ;;  %v533_v58 = vmul.f32 %v1027_v5, %v1027_v5 }
 0x126   :  { %v472_v49 = vadd.f32 %v471_v57, %v1005_v8  ;;  %v577_v7 = vadd.f32 %v576_v41, %v529_v29 }
 0x128   :  { %v578_v27 = vadd.f32 %v577_v7, %v530_v46  ;;  %v473_v59 = vadd.f32 %v472_v49, %v1009_v23 }
 0x12a   :  { %v474_v60 = vadd.f32 %v473_v59, %v1011_v44  ;;  %v579_v61 = vadd.f32 %v578_v27, %v531_v52  ;;  %v536_v44 = vmul.f32 %v1059_v63, %v1059_v63 }
 0x12c   :  { %v475_v62 = vadd.f32 %v474_v60, %v1027_v5  ;;  %v580_v0 = vadd.f32 %v579_v61, %v532_v54 }
 0x12e   :  { %v476_v8 = vadd.f32 %v475_v62, %v1043_v18  ;;  %v581_v2 = vadd.f32 %v580_v0, %v533_v58 }
 0x130   :  { %v582_v34 = vadd.f32 %v581_v2, %v534_v1  ;;  %v477_v23 = vadd.f32 %v476_v8, %v1051_v33  ;;  %v487_v33 = vld [vmem:[#allocation3] sm:$0x1] }
 0x132   :  { %v583_v4 = vadd.f32 %v582_v34, %v535_v37  ;;  %v478_v6 = vadd.f32 %v477_v23, %v1059_v63 }
 0x134   :  { %v479_v5 = vrot.slane %v478_v6, 4  ;;  %v584_v40 = vadd.f32 %v583_v4, %v536_v44 }
 0x136   :  { %v480_v36 = vadd.f32 %v479_v5, %v478_v6  ;;  %v585_v9 = vrot.slane %v584_v40, 4 }
 0x138   :  { %v481_v10 = vrot.slane %v480_v36, 2  ;;  %v586_v39 = vadd.f32 %v585_v9, %v584_v40 }
 0x13a   :  { %v482_v18 = vadd.f32 %v481_v10, %v480_v36  ;;  %v587_v43 = vrot.slane %v586_v39, 2 }
 0x13c   :  { %v483_v11 = vrot.slane %v482_v18, 1  ;;  %v588_v42 = vadd.f32 %v587_v43, %v586_v39 }
 0x13e   :  { %v484_v13 = vadd.f32 %v483_v11, %v482_v18  ;;  %v589_v14 = vrot.slane %v588_v42, 1 }
 0x140   :  { %v485_v51 = vadd.f32 %v484_v13, %v430_v48  ;;  %v590_v15 = vadd.f32 %v589_v14, %v588_v42 }
 0x142   :  { %486 = vst [vmem:[#allocation2] sm:$0x1] %v485_v51  ;;  %v591_v16 = vadd.f32 %v590_v15, %v487_v33 }
 0x144   :  { %592 = vst [vmem:[#allocation3] sm:$0x1] %v591_v16 }
 0x149   :  { %v596_v63 = vld [vmem:[#allocation2] sm:$0x1] }
 0x14a   :  { %v597_v55 = vmul.f32 0.0025510204, %v596_v63 }
 0x14b   :  { %v598_v45 = vld [vmem:[#allocation3] sm:$0x1] }
 0x14c   :  { %v599_v17 = vmul.f32 0.0025510204, %v598_v45  ;;  %v600_v3 = vmul.f32 %v597_v55, %v597_v55 }
 0x14e   :  { %v601_v47 = vsub.f32 %v599_v17, %v600_v3 }
 0x150   :  { %v602_v19 = vmax.f32 %v601_v47, 0.0 }
 0x152   :  { %v604_v20 = vadd.f32 1e-05, %v602_v19 }
 0x154   :  { %803 = vrsqrt.f32 %v604_v20  ;;  %vm611_vm3 = vweird.f32 %v604_v20 }
 0x15a   :  { %v804_v21 = vpop.eup %803 }
 0x15b   :  { %v606_v50 = vmul.f32 %v804_v21, %v604_v20  ;;  %vm612_vm2 = vweird.f32 %v804_v21 }
 0x15c   :  { %vm613_vm4 = vmor %vm611_vm3, %vm612_vm2 }
 0x15d   :  { %v607_v24 = vmul.f32 %v804_v21, %v606_v50 }
 0x15f   :  { %v608_v25 = vmul.f32 0.5, %v607_v24 }
 0x161   :  { %v609_v22 = vsub.f32 1.5, %v608_v25 }
 0x163   :  { %v610_v28 = vmul.f32 %v804_v21, %v609_v22 }
 0x165   :  { %v614_v53 = vsel %vm613_vm4, %v804_v21, %v610_v28 }
 0x166   :  { %v615_v30 = vmul.f32 %v614_v53, %v603_v26 }
 0x168   :  { %v617_v32 = vmul.f32 %v615_v30, %v597_v55  ;;  %619 = vst [vmem:[#allocation4] sm:$0x1] %v615_v30 }
 0x16a   :  { %v618_v56 = vsub.f32 %v616_v31, %v617_v32 }
 0x16c   :  { %620 = vst [vmem:[#allocation4 + $0x1] sm:$0x1] %v618_v56 }
 0x16d   :  { %631 = dma.vmem_to_hbm [thread:$0]  %s627_s21, 32, %s629_s24, [#allocation5]  }
 0x16e   :  { %829 = dma.done.wait [#allocation5], 32  }
 0x16f   :  { %830 = vsyncadd [#allocation5], 4294967264 }
 0x170   :  { %636 = vsyncpa [#allocation5], 1 }

</bundles_post_ra>
